<compile_context>
chip_gen: v5e
topology: v5e:2x2
jax: 0.10.0
libtpu: 0.0.40
codegen_flags: <defaults>
</compile_context>

<pallas_src>
import jax
import jax.numpy as jnp
from jax import lax
from jax.experimental import pallas as pl
from jax.experimental.pallas import tpu as pltpu


def _qnet_kernel(w1t_ref, b1_ref, w2t_ref, b2_ref, x_ref, oT_ref):
    # hidden^T = w1^T @ x^T computed directly from the natural (tb, F) x tile
    # by contracting the F axis of both operands (transpose absorbed into the
    # MXU feed instead of a separate wrapper-side XLA transpose).
    h = lax.dot_general(
        w1t_ref[...], x_ref[...],
        dimension_numbers=(((1,), (1,)), ((), ())),
        preferred_element_type=jnp.float32,
    )                                                    # (H, tb), f32 accumulate
    h = jnp.maximum(h + b1_ref[...], 0.0)                # bias + ReLU in f32 (v5e-safe)
    # Second matmul stays f32: K = H is tiny, bf16 saves no MXU time here and
    # would only cost precision on Q-value outputs.
    y = jnp.dot(w2t_ref[...], h, preferred_element_type=jnp.float32)  # (O_pad, tb)
    oT_ref[...] = (y + b2_ref[...]).astype(oT_ref.dtype)


def linear_qnet_forward(x, w1, b1, w2, b2, *, block_b=16384):
    """Forward pass of Linear_QNet: relu(x @ w1 + b1) @ w2 + b2.

    x: (B, F)  w1: (F, H)  b1: (H,)  w2: (H, O)  b2: (O,)   ->  (B, O)

    block_b: target batch-tile size (will be rounded to a multiple of 128 when
             the batch is split across grid steps).  If x arrives in bf16, the
             first matmul runs with bf16 operands (f32 accumulate) on any TPU
             generation; everything else stays f32.
    """
    B, F = x.shape
    H = w1.shape[1]
    O = w2.shape[1]
    out_dtype = x.dtype

    # --- batch tiling: pad only to a multiple of 128 (not of block_b) --------
    if B <= block_b:
        num_tiles, tb, b_pad = 1, B, B                  # single full-extent tile, no pad
    else:
        n128 = pl.cdiv(B, 128)                          # 128-aligned batch, in lane blocks
        num_tiles = max(1, pl.cdiv(n128 * 128, block_b))
        tb_blocks = pl.cdiv(n128, num_tiles)
        # Prefer an even tile count (v7x megacore sharding) when it costs no
        # extra padding; no effect on v5e/v6e.
        even_tiles = num_tiles + (num_tiles % 2)
        if pl.cdiv(n128, even_tiles) * even_tiles <= tb_blocks * num_tiles:
            num_tiles = even_tiles
            tb_blocks = pl.cdiv(n128, num_tiles)
        tb = tb_blocks * 128
        b_pad = num_tiles * tb

    x_in = x if b_pad == B else jnp.pad(x, ((0, b_pad - B), (0, 0)))

    # --- operands: weights feature-major, biases as f32 columns --------------
    # First matmul runs in x's own dtype only if x is already sub-32-bit
    # (no wrapper-side cast of x); otherwise f32.
    first_mm_dtype = x.dtype if jnp.dtype(x.dtype).itemsize < 4 else jnp.float32
    w1t = w1.T.astype(first_mm_dtype)                   # (H, F)
    b1c = b1.reshape(H, 1).astype(jnp.float32)          # (H, 1)

    O_pad = pl.cdiv(O, 8) * 8                           # fill store-vreg sublanes
    w2t_p = jnp.zeros((O_pad, H), jnp.float32).at[:O, :].set(w2.T.astype(jnp.float32))
    b2c_p = jnp.zeros((O_pad, 1), jnp.float32).at[:O, 0].set(b2.astype(jnp.float32))

    # --- VMEM budget / cost hint ---------------------------------------------
    x_item = jnp.dtype(x_in.dtype).itemsize
    o_item = jnp.dtype(out_dtype).itemsize
    est_vmem = (2 * (tb * F * x_item + O_pad * tb * o_item)         # dbl-buffered in/out
                + w1t.size * jnp.dtype(first_mm_dtype).itemsize
                + (w2t_p.size + H + O_pad) * 4
                + (1 << 20))                                        # headroom
    vmem_limit = est_vmem if est_vmem > (12 << 20) else None        # raise only past v5e's 16 MiB default

    cost = pl.CostEstimate(
        flops=2 * b_pad * (F * H + H * O_pad),
        transcendentals=0,
        bytes_accessed=(b_pad * F * x_item + b_pad * O_pad * o_item
                        + w1t.size * jnp.dtype(first_mm_dtype).itemsize
                        + (w2t_p.size + H + O_pad) * 4),
    )

    def const(shape):
        return pl.BlockSpec(shape, lambda i: (0,) * len(shape))

    outT = pl.pallas_call(
        _qnet_kernel,
        out_shape=jax.ShapeDtypeStruct((O_pad, b_pad), out_dtype),
        grid=(num_tiles,),
        in_specs=[
            const(w1t.shape),                            # weights / biases stay
            const(b1c.shape),                            # VMEM-resident across
            const(w2t_p.shape),                          # all batch tiles
            const(b2c_p.shape),
            pl.BlockSpec((tb, F), lambda i: (i, 0)),     # natural-layout x, batch-tiled
        ],
        out_specs=pl.BlockSpec((O_pad, tb), lambda i: (0, i)),  # lane-dense output slab
        compiler_params=pltpu.CompilerParams(
            dimension_semantics=("parallel",),           # megacore split on v7x
            vmem_limit_bytes=vmem_limit,
        ),
        cost_estimate=cost,
    )(w1t, b1c, w2t_p, b2c_p, x_in)

    return outT[:O, :B].T                                # tiny output: cheap slice+transpose


def init_params(key, input_size, hidden_size, output_size, dtype=jnp.float32):
    """Deterministic init matching nn.Linear's U(-1/sqrt(fan_in), 1/sqrt(fan_in))."""
    k1, k2, k3, k4 = jax.random.split(key, 4)
    bound1 = 1.0 / (input_size ** 0.5)
    bound2 = 1.0 / (hidden_size ** 0.5)
    w1 = jax.random.uniform(k1, (input_size, hidden_size), dtype, -bound1, bound1)
    b1 = jax.random.uniform(k2, (hidden_size,), dtype, -bound1, bound1)
    w2 = jax.random.uniform(k3, (hidden_size, output_size), dtype, -bound2, bound2)
    b2 = jax.random.uniform(k4, (output_size,), dtype, -bound2, bound2)
    return w1, b1, w2, b2


if __name__ == "__main__":
    # Small shapes consistent with the module (snake Q-net style sizes).
    batch, input_size, hidden_size, output_size = 2, 16, 32, 4

    key = jax.random.PRNGKey(0)
    kx, kp, kb = jax.random.split(key, 3)
    x = jax.random.normal(kx, (batch, input_size), dtype=jnp.float32)
    w1, b1, w2, b2 = init_params(kp, input_size, hidden_size, output_size)

    ref_fn = lambda xv: jnp.maximum(xv.astype(jnp.float32) @ w1 + b1, 0.0) @ w2 + b2

    # 1) Toy batch (single full-extent tile, no padding), float32.
    out = linear_qnet_forward(x, w1, b1, w2, b2)
    jax.block_until_ready(out)
    assert out.shape == (batch, output_size)
    assert jnp.allclose(out, ref_fn(x), atol=1e-5, rtol=1e-5)

    # 2) Tiled/pipelined path: small block_b forces a multi-tile grid with a
    #    non-multiple-of-128 batch (exercises 128-aligned padding, grid
    #    pipelining and VMEM-resident weights).  1027 -> padded to 1152 only.
    xb = jax.random.normal(kb, (1027, input_size), dtype=jnp.float32)
    out_b = linear_qnet_forward(xb, w1, b1, w2, b2, block_b=512)
    jax.block_until_ready(out_b)
    assert out_b.shape == (1027, output_size)
    assert jnp.allclose(out_b, ref_fn(xb), atol=1e-4, rtol=1e-4)

    # 3) bf16-activation path (x already stored in bf16 upstream): first matmul
    #    runs with bf16 operands on the MXU, everything else stays f32.
    xb_bf16 = xb.astype(jnp.bfloat16)
    out_bf = linear_qnet_forward(xb_bf16, w1, b1, w2, b2, block_b=512)
    jax.block_until_ready(out_bf)
    assert out_bf.shape == (1027, output_size)
    assert jnp.allclose(out_bf.astype(jnp.float32), ref_fn(xb_bf16),
                        atol=5e-2, rtol=5e-2)

    # TODO(synk): Linear_QNet.save() (torch.save checkpointing) is host-side
    # file I/O with no Pallas equivalent; not implemented.
    print("KERNEL_OK")
</pallas_src>

<mosaic_0001>
module attributes {stable_mosaic.version = 11 : i64} {
  func.func @_qnet_kernel(%arg0: i32, %arg1: memref<32x16xf32, #tpu.memory_space<vmem>>, %arg2: memref<32x1xf32, #tpu.memory_space<vmem>>, %arg3: memref<8x32xf32, #tpu.memory_space<vmem>>, %arg4: memref<8x1xf32, #tpu.memory_space<vmem>>, %arg5: memref<2x16xf32, #tpu.memory_space<vmem>>, %arg6: memref<8x2xf32, #tpu.memory_space<vmem>>) attributes {dimension_semantics = [#tpu.dimension_semantics<parallel>], iteration_bounds = array<i64: 1>, scalar_prefetch = 0 : i64, scratch_operands = 0 : i64, tpu.core_type = #tpu.core_type<tc>, window_params = [{pipeline_mode = #tpu.pipeline_mode<synchronous>, transform_indices = @transform_0, window_bounds = array<i64: 32, 16>}, {pipeline_mode = #tpu.pipeline_mode<synchronous>, transform_indices = @transform_1, window_bounds = array<i64: 32, 1>}, {pipeline_mode = #tpu.pipeline_mode<synchronous>, transform_indices = @transform_2, window_bounds = array<i64: 8, 32>}, {pipeline_mode = #tpu.pipeline_mode<synchronous>, transform_indices = @transform_3, window_bounds = array<i64: 8, 1>}, {transform_indices = @transform_4, window_bounds = array<i64: 2, 16>}, {transform_indices = @transform_5, window_bounds = array<i64: 8, 2>}]} {
    %c0 = arith.constant 0 : index
    %c0_0 = arith.constant 0 : index
    %0 = vector.load %arg1[%c0, %c0_0] : memref<32x16xf32, #tpu.memory_space<vmem>>, vector<32x16xf32>
    %c0_1 = arith.constant 0 : index
    %c0_2 = arith.constant 0 : index
    %1 = vector.load %arg5[%c0_1, %c0_2] : memref<2x16xf32, #tpu.memory_space<vmem>>, vector<2x16xf32>
    %cst = arith.constant dense<0.000000e+00> : vector<32x2xf32>
    %2 = tpu.matmul %0, %1, %cst {dimension_numbers = #tpu.dot_dimension_numbers<[1], [1], [0], [0], [0, 0, 1, 0], [], []>} : vector<32x16xf32>, vector<2x16xf32>, vector<32x2xf32> -> vector<32x2xf32>
    %c0_3 = arith.constant 0 : index
    %c0_4 = arith.constant 0 : index
    %3 = vector.load %arg2[%c0_3, %c0_4] : memref<32x1xf32, #tpu.memory_space<vmem>>, vector<32x1xf32>
    %4 = vector.broadcast %3 : vector<32x1xf32> to vector<32x2xf32>
    %5 = arith.addf %2, %4 : vector<32x2xf32>
    %cst_5 = arith.constant 0.000000e+00 : f32
    %6 = vector.broadcast %cst_5 : f32 to vector<32x2xf32>
    %7 = arith.maximumf %5, %6 : vector<32x2xf32>
    %c0_6 = arith.constant 0 : index
    %c0_7 = arith.constant 0 : index
    %8 = vector.load %arg3[%c0_6, %c0_7] : memref<8x32xf32, #tpu.memory_space<vmem>>, vector<8x32xf32>
    %cst_8 = arith.constant dense<0.000000e+00> : vector<8x2xf32>
    %9 = tpu.matmul %8, %7, %cst_8 {dimension_numbers = #tpu.dot_dimension_numbers<[1], [0], [0], [1], [0, 0, 1, 1], [], []>} : vector<8x32xf32>, vector<32x2xf32>, vector<8x2xf32> -> vector<8x2xf32>
    %c0_9 = arith.constant 0 : index
    %c0_10 = arith.constant 0 : index
    %10 = vector.load %arg4[%c0_9, %c0_10] : memref<8x1xf32, #tpu.memory_space<vmem>>, vector<8x1xf32>
    %11 = vector.broadcast %10 : vector<8x1xf32> to vector<8x2xf32>
    %12 = arith.addf %9, %11 : vector<8x2xf32>
    %c0_11 = arith.constant 0 : index
    %c0_12 = arith.constant 0 : index
    %13 = vector.load %arg6[%c0_11, %c0_12] : memref<8x2xf32, #tpu.memory_space<vmem>>, vector<8x2xf32>
    tpu.vector_store %arg6[%c0_11, %c0_12], %12 {strides = array<i32>} : memref<8x2xf32, #tpu.memory_space<vmem>>, vector<8x2xf32>,
    return
  }
  func.func @transform_0(%arg0: i32) -> (i32, i32) {
    %c0_i32 = arith.constant 0 : i32
    %c0_i32_0 = arith.constant 0 : i32
    %c0_i32_1 = arith.constant 0 : i32
    return %c0_i32, %c0_i32_0 : i32, i32
  }
  func.func @transform_1(%arg0: i32) -> (i32, i32) {
    %c0_i32 = arith.constant 0 : i32
    %c0_i32_0 = arith.constant 0 : i32
    %c0_i32_1 = arith.constant 0 : i32
    return %c0_i32, %c0_i32_0 : i32, i32
  }
  func.func @transform_2(%arg0: i32) -> (i32, i32) {
    %c0_i32 = arith.constant 0 : i32
    %c0_i32_0 = arith.constant 0 : i32
    %c0_i32_1 = arith.constant 0 : i32
    return %c0_i32, %c0_i32_0 : i32, i32
  }
  func.func @transform_3(%arg0: i32) -> (i32, i32) {
    %c0_i32 = arith.constant 0 : i32
    %c0_i32_0 = arith.constant 0 : i32
    %c0_i32_1 = arith.constant 0 : i32
    return %c0_i32, %c0_i32_0 : i32, i32
  }
  func.func @transform_4(%arg0: i32) -> (i32, i32) {
    %c0_i32 = arith.constant 0 : i32
    %c0_i32_0 = arith.constant 0 : i32
    return %arg0, %c0_i32 : i32, i32
  }
  func.func @transform_5(%arg0: i32) -> (i32, i32) {
    %c0_i32 = arith.constant 0 : i32
    %c0_i32_0 = arith.constant 0 : i32
    return %c0_i32, %arg0 : i32, i32
  }
}

</mosaic_0001>

<bundles_post_ra>
// kernel: tpu_custom_call.1
= control target key start
LH: loop header
LB: loop body
LE: loop exit
PB: predicated region body
PF: predicated region fallthrough
CT: control target
= control target key end

     0   :  { %vm49_vm0 = vcmask 130048   ;;  %v147_v1 = vmov 0   ;;  %vm105_vm1 = vcmask 261120   ;;  %vm129_vm2 = vcmask 15360   ;;  %s221_s4 = inlined_call_operand.vmem [shape: f32[2,16], index: 4, kind: input, shape index: {}]   ;;  %s222_s0 = inlined_call_operand.vmem [shape: f32[32,16], index: 0, kind: input, shape index: {}]   ;;  %s223_s1 = inlined_call_operand.vmem [shape: f32[32,1], index: 1, kind: input, shape index: {}]   ;;  %s224_s3 = inlined_call_operand.vmem [shape: f32[8,1], index: 3, kind: input, shape index: {}]   ;;  %s225_s2 = inlined_call_operand.vmem [shape: f32[8,32], index: 2, kind: input, shape index: {}]   ;;  %s226_s5 = inlined_call_operand.vmem [shape: f32[8,2], index: 5, kind: output, shape index: {}]  }
   0x1   :  { %v24_v0 = vld [vmem:[%s221_s4] sm:$0x3]  ;;  %144 = vset.pattern.permute.xlu0 %v147_v1  ;;  %145 = vset.pattern.permute.xlu1 %v147_v1  ;;  %v21_v2 = vld [vmem:[%s222_s0 + $0x8] sm:$0xff]  ;;  %v23_v3 = vld [vmem:[%s222_s0 + $0x18] sm:$0xff] }
   0x2   :  { %141 = vmatpush.xpose.msk.msra.mxu2 %vm49_vm0, %v24_v0  ;;  %142 = vmatpush.xpose.msk.msra.mxu3 %vm49_vm0, %v24_v0  ;;  %v28_v4 = vld [vmem:[%s223_s1 + $0x18] sm:$0xff]  ;;  %v20_v5 = vld [vmem:[%s222_s0] sm:$0xff]  ;;  %v26_v6 = vld [vmem:[%s223_s1 + $0x8] sm:$0xff] }
   0x3   :  { %135 = vmatpush.xpose.msk.msra.mxu0 %vm49_vm0, %v24_v0  ;;  %46 = vperm.xlu0 %144, %v28_v4   ;;  %v27_v7 = vld [vmem:[%s223_s1 + $0x10] sm:$0xff]  ;;  %v25_v8 = vld [vmem:[%s223_s1] sm:$0xff] }
   0x4   :  { %36 = vperm.xlu1 %145, %v26_v6   ;;  %146 = vset.pattern.permute.xlu2 %v147_v1  ;;  %v22_v9 = vld [vmem:[%s222_s0 + $0x10] sm:$0xff]  ;;  %v99_v10 = vld [vmem:[%s224_s3] sm:$0xff] }
   0x5   :  { %137 = vmatmul.msk.f32.vlgmr.msra.gmra.mxu2 %vm49_vm0, %v21_v2  ;;  %139 = vmatmul.msk.f32.vlgmr.msra.gmra.mxu3 %vm49_vm0, %v23_v3  ;;  %v98_v27 = vld [vmem:[%s225_s2] sm:$0xff] }
   0x6   :  { %136 = vmatmul.msk.f32.vlgmr.msra.gmra.mxu0 %vm49_vm0, %v20_v5  ;;  %102 = vperm.xlu2 %146, %v99_v10  }
   0xb   :  { %41 = vperm.xlu0 %144, %v27_v7  }
   0xc   :  { %31 = vperm.xlu1 %145, %v25_v8  }
   0xd   :  { %138 = vmatmul.msk.f32.gmra.mxu2 %vm49_vm0, %v22_v9 }
  0x60   :  { %v103_v28 = vpop.permute.xlu2 %102 }
  0x75   :  { %v47_v11 = vpop.permute.xlu0 %46 }
  0x76   :  { %v37_v12 = vpop.permute.xlu1 %36 }
  0x7d   :  { %v42_v17 = vpop.permute.xlu0 %41 }
  0x7e   :  { %v32_v18 = vpop.permute.xlu1 %31 }
  0x83   :  { %v82_v19 = vpop.f32.mrf.mxu0 }
  0x84   :  { %v83_v23 = vadd.f32 %v82_v19, %v32_v18 }
  0x86   :  { %v94_v26 = vmax.f32 %v83_v23, 0.0 }
  0x88   :  { %v85_v13 = vpop.f32.mrf.mxu2  ;;  %v91_v14 = vpop.f32.mrf.mxu3 }
  0x89   :  { %v92_v15 = vadd.f32 %v91_v14, %v47_v11  ;;  %v86_v21 = vadd.f32 %v85_v13, %v37_v12 }
  0x8b   :  { %v97_v16 = vmax.f32 %v92_v15, 0.0  ;;  %v95_v25 = vmax.f32 %v86_v21, 0.0 }
  0x8d   :  { %121 = vmatpush.msra.mxu1 %v97_v16 }
  0x90   :  { %v88_v20 = vpop.f32.mrf.mxu2 }
  0x91   :  { %v89_v22 = vadd.f32 %v88_v20, %v42_v17 }
  0x93   :  { %v96_v24 = vmax.f32 %v89_v22, 0.0 }
  0x95   :  { %122 = vmatpush.msra.mxu1 %v96_v24 }
  0x97   :  { %123 = vmatpush.msra.mxu1 %v95_v25 }
  0x99   :  { %124 = vmatpush.msra.mxu1 %v94_v26 }
  0x9a   :  { %140 = vmatmul.msk.f32.vlgmr.msra.gmra.mxu1 %vm105_vm1, %v98_v27 }
 0x117   :  { %v126_v29 = vpop.f32.mrf.mxu1 }
 0x118   :  { %v127_v30 = vadd.f32 %v126_v29, %v103_v28 }
 0x11a   :  { %130 = vst.msk [vmem:[%s226_s5] sm:$0xff] %vm129_vm2, %v127_v30 }

</bundles_post_ra>
